<compile_context>
chip_gen: v5e
topology: v5e:2x2
jax: 0.10.0
libtpu: 0.0.40
codegen_flags: <defaults>
</compile_context>

<pallas_src>
import functools

import jax
import jax.numpy as jnp
from jax import lax
from jax.experimental import pallas as pl
from jax.experimental.pallas import tpu as pltpu


def _round_up(x, m):
    return (x + m - 1) // m * m


def _cbow_kernel(x_smem, emb_ref, wt_ref, b_ref, out_ref, bow_ref, *, ctx_len, tb):
    i = pl.program_id(0)  # batch tile
    j = pl.program_id(1)  # vocab tile

    # Compute bow (mean of context embeddings) for this batch tile exactly once;
    # it is reused for every vocab tile of the same batch tile.
    @pl.when(j == 0)
    def _():
        inv_l = jnp.float32(1.0 / ctx_len)
        e_pad = bow_ref.shape[1]

        def per_row(r, carry):
            row = i * tb + r  # global (padded) batch row

            def per_tok(l, acc):
                tok = x_smem[row, l]                      # scalar id from SMEM
                return acc + emb_ref[pl.ds(tok, 1), :]    # gather one emb row

            acc0 = jnp.zeros((1, e_pad), jnp.float32)
            row_sum = lax.fori_loop(0, ctx_len, per_tok, acc0, unroll=True)
            bow_ref[pl.ds(r, 1), :] = row_sum * inv_l      # fold 1/L mean here
            return carry

        lax.fori_loop(0, tb, per_row, 0)

    # logits tile = bow @ W^T tile + bias tile   (MXU, f32 accumulate)
    out_ref[...] = (
        jnp.dot(bow_ref[...], wt_ref[...], preferred_element_type=jnp.float32)
        + b_ref[...]
    )


def cbow_forward(x, emb_table, lin_weight, lin_bias, *, tb=None, tn=None):
    """x: (B, L) int ids; emb_table: (V, E); lin_weight: (V, E); lin_bias: (V,)."""
    B, L = x.shape
    V, E = emb_table.shape
    f32 = jnp.float32

    # Lane/sublane-friendly padding.
    e_pad = _round_up(max(E, 128), 128)          # lane-dense K for the logits matmul
    b_min = _round_up(max(B, 8), 8)              # sublane multiple
    if tb is None:
        tb = min(128, b_min)                     # fill MXU rows when B is large
    b_pad = _round_up(b_min, tb)
    if tn is None:
        tn = min(512, _round_up(V, 128))         # vocab tile (multiple of 128 lanes)
    v_pad = _round_up(V, tn)

    # Zero-padding is exact: padded E columns hit zero W^T rows; padded vocab
    # columns / batch rows are sliced off below.  Padded batch rows use id 0.
    x_p = jnp.zeros((b_pad, L), jnp.int32).at[:B].set(x.astype(jnp.int32))
    emb_p = jnp.zeros((V, e_pad), f32).at[:, :E].set(emb_table.astype(f32))
    w_t = jnp.zeros((e_pad, v_pad), f32).at[:E, :V].set(lin_weight.astype(f32).T)
    bias_p = jnp.zeros((1, v_pad), f32).at[0, :V].set(lin_bias.astype(f32))

    nb = b_pad // tb
    nv = v_pad // tn

    kernel = functools.partial(_cbow_kernel, ctx_len=L, tb=tb)

    out = pl.pallas_call(
        kernel,
        out_shape=jax.ShapeDtypeStruct((b_pad, v_pad), f32),
        grid_spec=pltpu.PrefetchScalarGridSpec(
            num_scalar_prefetch=1,               # x -> SMEM (addressing data)
            grid=(nb, nv),
            in_specs=[
                # Whole (padded) embedding table, one VMEM-resident block
                # (constant block index -> fetched once, no re-DMA).
                pl.BlockSpec((V, e_pad), lambda i, j, ids: (0, 0)),
                # Stream W^T and bias by vocab tile (pipeline double-buffers).
                pl.BlockSpec((e_pad, tn), lambda i, j, ids: (0, j)),
                pl.BlockSpec((1, tn), lambda i, j, ids: (0, j)),
            ],
            out_specs=pl.BlockSpec((tb, tn), lambda i, j, ids: (i, j)),
            scratch_shapes=[pltpu.VMEM((tb, e_pad), f32)],  # persistent bow tile
        ),
        compiler_params=pltpu.CompilerParams(
            # Batch tiles are independent (shard across TCs on v7x); vocab tiles
            # carry the bow scratch so they stay sequential.
            dimension_semantics=("parallel", "arbitrary"),
        ),
    )(x_p, emb_p, w_t, bias_p)

    return out[:B, :V]


def cbow_reference(x, emb_table, lin_weight, lin_bias):
    embeddings = jnp.take(emb_table, x, axis=0)   # (B, L, E)
    bow = embeddings.mean(axis=1)                 # (B, E)
    return bow @ lin_weight.T + lin_bias          # (B, V)


if __name__ == "__main__":
    keys = jax.random.split(jax.random.PRNGKey(0), 8)

    # Config 1: original toy shapes (single vocab tile, single batch tile).
    B, L, V, E = 8, 8, 128, 64
    x = jax.random.randint(keys[0], (B, L), 0, V, dtype=jnp.int32)
    emb = jax.random.normal(keys[1], (V, E), jnp.float32) * 0.1
    w = jax.random.normal(keys[2], (V, E), jnp.float32) * 0.1   # nn.Linear(E, V).weight
    b = jax.random.normal(keys[3], (V,), jnp.float32) * 0.1     # nn.Linear(E, V).bias

    out = jax.block_until_ready(cbow_forward(x, emb, w, b))
    ref = cbow_reference(x, emb, w, b)
    assert out.shape == (B, V)
    assert jnp.allclose(out, ref, atol=1e-5, rtol=1e-5), "mismatch vs reference (config 1)"

    # Config 2: odd shapes exercising padding (B=5, E=48, V=300) and a
    # multi-tile vocab grid (tn=128 -> 3 vocab tiles).
    B2, L2, V2, E2 = 5, 6, 300, 48
    x2 = jax.random.randint(keys[4], (B2, L2), 0, V2, dtype=jnp.int32)
    emb2 = jax.random.normal(keys[5], (V2, E2), jnp.float32) * 0.1
    w2 = jax.random.normal(keys[6], (V2, E2), jnp.float32) * 0.1
    b2 = jax.random.normal(keys[7], (V2,), jnp.float32) * 0.1

    out2 = jax.block_until_ready(cbow_forward(x2, emb2, w2, b2, tn=128))
    ref2 = cbow_reference(x2, emb2, w2, b2)
    assert out2.shape == (B2, V2)
    assert jnp.allclose(out2, ref2, atol=1e-5, rtol=1e-5), "mismatch vs reference (config 2)"

    print("KERNEL_OK")
</pallas_src>

<mosaic_0001>
module attributes {stable_mosaic.version = 11 : i64} {
  func.func @_cbow_kernel(%arg0: i32, %arg1: i32, %arg2: memref<8x8xi32, #tpu.memory_space<smem>>, %arg3: memref<128x128xf32, #tpu.memory_space<vmem>>, %arg4: memref<128x128xf32, #tpu.memory_space<vmem>>, %arg5: memref<1x128xf32, #tpu.memory_space<vmem>>, %arg6: memref<8x128xf32, #tpu.memory_space<vmem>>, %arg7: memref<8x128xf32, #tpu.memory_space<vmem>>) attributes {dimension_semantics = [#tpu.dimension_semantics<parallel>, #tpu.dimension_semantics<arbitrary>], iteration_bounds = array<i64: 1, 1>, scalar_prefetch = 1 : i64, scratch_operands = 1 : i64, tpu.core_type = #tpu.core_type<tc>, window_params = [{pipeline_mode = #tpu.pipeline_mode<synchronous>, transform_indices = @transform_0, window_bounds = array<i64: 128, 128>}, {transform_indices = @transform_1, window_bounds = array<i64: 128, 128>}, {transform_indices = @transform_2, window_bounds = array<i64: 1, 128>}, {transform_indices = @transform_3, window_bounds = array<i64: 8, 128>}]} {
    %c0_i32 = arith.constant 0 : i32
    %0 = arith.cmpi eq, %arg1, %c0_i32 : i32
    %1 = arith.extui %0 : i1 to i32
    %c0_i32_0 = arith.constant 0 : i32
    %2 = arith.cmpi ne, %1, %c0_i32_0 : i32
    scf.if %2 {
      %cst_8 = arith.constant 1.250000e-01 : f32
      %c0_i32_9 = arith.constant 0 : i32
      %c8_i32 = arith.constant 8 : i32
      %10 = arith.addi %c0_i32_9, %c8_i32 : i32
      %c1_i32 = arith.constant 1 : i32
      scf.for %arg8 = %c0_i32_9 to %10 step %c1_i32  : i32 {
        %c8_i32_11 = arith.constant 8 : i32
        %11 = arith.muli %arg0, %c8_i32_11 : i32
        %12 = arith.addi %11, %arg8 : i32
        %cst_12 = arith.constant 0.000000e+00 : f32
        %13 = vector.broadcast %cst_12 : f32 to vector<1x128xf32>
        %c0_i32_13 = arith.constant 0 : i32
        %14 = arith.index_cast %12 : i32 to index
        %15 = arith.index_cast %c0_i32_13 : i32 to index
        %16 = memref.load %arg2[%14, %15] : memref<8x8xi32, #tpu.memory_space<smem>>
        %17 = arith.index_cast %16 : i32 to index
        %c0_14 = arith.constant 0 : index
        %18 = vector.load %arg3[%17, %c0_14] : memref<128x128xf32, #tpu.memory_space<vmem>>, vector<1x128xf32>
        %19 = arith.addf %13, %18 : vector<1x128xf32>
        %c1_i32_15 = arith.constant 1 : i32
        %20 = arith.index_cast %12 : i32 to index
        %21 = arith.index_cast %c1_i32_15 : i32 to index
        %22 = memref.load %arg2[%20, %21] : memref<8x8xi32, #tpu.memory_space<smem>>
        %23 = arith.index_cast %22 : i32 to index
        %c0_16 = arith.constant 0 : index
        %24 = vector.load %arg3[%23, %c0_16] : memref<128x128xf32, #tpu.memory_space<vmem>>, vector<1x128xf32>
        %25 = arith.addf %19, %24 : vector<1x128xf32>
        %c2_i32 = arith.constant 2 : i32
        %26 = arith.index_cast %12 : i32 to index
        %27 = arith.index_cast %c2_i32 : i32 to index
        %28 = memref.load %arg2[%26, %27] : memref<8x8xi32, #tpu.memory_space<smem>>
        %29 = arith.index_cast %28 : i32 to index
        %c0_17 = arith.constant 0 : index
        %30 = vector.load %arg3[%29, %c0_17] : memref<128x128xf32, #tpu.memory_space<vmem>>, vector<1x128xf32>
        %31 = arith.addf %25, %30 : vector<1x128xf32>
        %c3_i32 = arith.constant 3 : i32
        %32 = arith.index_cast %12 : i32 to index
        %33 = arith.index_cast %c3_i32 : i32 to index
        %34 = memref.load %arg2[%32, %33] : memref<8x8xi32, #tpu.memory_space<smem>>
        %35 = arith.index_cast %34 : i32 to index
        %c0_18 = arith.constant 0 : index
        %36 = vector.load %arg3[%35, %c0_18] : memref<128x128xf32, #tpu.memory_space<vmem>>, vector<1x128xf32>
        %37 = arith.addf %31, %36 : vector<1x128xf32>
        %c4_i32 = arith.constant 4 : i32
        %38 = arith.index_cast %12 : i32 to index
        %39 = arith.index_cast %c4_i32 : i32 to index
        %40 = memref.load %arg2[%38, %39] : memref<8x8xi32, #tpu.memory_space<smem>>
        %41 = arith.index_cast %40 : i32 to index
        %c0_19 = arith.constant 0 : index
        %42 = vector.load %arg3[%41, %c0_19] : memref<128x128xf32, #tpu.memory_space<vmem>>, vector<1x128xf32>
        %43 = arith.addf %37, %42 : vector<1x128xf32>
        %c5_i32 = arith.constant 5 : i32
        %44 = arith.index_cast %12 : i32 to index
        %45 = arith.index_cast %c5_i32 : i32 to index
        %46 = memref.load %arg2[%44, %45] : memref<8x8xi32, #tpu.memory_space<smem>>
        %47 = arith.index_cast %46 : i32 to index
        %c0_20 = arith.constant 0 : index
        %48 = vector.load %arg3[%47, %c0_20] : memref<128x128xf32, #tpu.memory_space<vmem>>, vector<1x128xf32>
        %49 = arith.addf %43, %48 : vector<1x128xf32>
        %c6_i32 = arith.constant 6 : i32
        %50 = arith.index_cast %12 : i32 to index
        %51 = arith.index_cast %c6_i32 : i32 to index
        %52 = memref.load %arg2[%50, %51] : memref<8x8xi32, #tpu.memory_space<smem>>
        %53 = arith.index_cast %52 : i32 to index
        %c0_21 = arith.constant 0 : index
        %54 = vector.load %arg3[%53, %c0_21] : memref<128x128xf32, #tpu.memory_space<vmem>>, vector<1x128xf32>
        %55 = arith.addf %49, %54 : vector<1x128xf32>
        %c7_i32 = arith.constant 7 : i32
        %56 = arith.index_cast %12 : i32 to index
        %57 = arith.index_cast %c7_i32 : i32 to index
        %58 = memref.load %arg2[%56, %57] : memref<8x8xi32, #tpu.memory_space<smem>>
        %59 = arith.index_cast %58 : i32 to index
        %c0_22 = arith.constant 0 : index
        %60 = vector.load %arg3[%59, %c0_22] : memref<128x128xf32, #tpu.memory_space<vmem>>, vector<1x128xf32>
        %61 = arith.addf %55, %60 : vector<1x128xf32>
        %c8_i32_23 = arith.constant 8 : i32
        %62 = vector.broadcast %cst_8 : f32 to vector<1x128xf32>
        %63 = arith.mulf %61, %62 : vector<1x128xf32>
        %64 = arith.index_cast %arg8 : i32 to index
        %c0_24 = arith.constant 0 : index
        %65 = vector.load %arg7[%64, %c0_24] : memref<8x128xf32, #tpu.memory_space<vmem>>, vector<1x128xf32>
        tpu.vector_store %arg7[%64, %c0_24], %63 {strides = array<i32>} : memref<8x128xf32, #tpu.memory_space<vmem>>, vector<1x128xf32>,
      }
      %c8_i32_10 = arith.constant 8 : i32
    } else {
    }
    %c0 = arith.constant 0 : index
    %c0_1 = arith.constant 0 : index
    %3 = vector.load %arg7[%c0, %c0_1] : memref<8x128xf32, #tpu.memory_space<vmem>>, vector<8x128xf32>
    %c0_2 = arith.constant 0 : index
    %c0_3 = arith.constant 0 : index
    %4 = vector.load %arg4[%c0_2, %c0_3] : memref<128x128xf32, #tpu.memory_space<vmem>>, vector<128x128xf32>
    %cst = arith.constant dense<0.000000e+00> : vector<8x128xf32>
    %5 = tpu.matmul %3, %4, %cst {dimension_numbers = #tpu.dot_dimension_numbers<[1], [0], [0], [1], [0, 0, 1, 1], [], []>} : vector<8x128xf32>, vector<128x128xf32>, vector<8x128xf32> -> vector<8x128xf32>
    %c0_4 = arith.constant 0 : index
    %c0_5 = arith.constant 0 : index
    %6 = vector.load %arg5[%c0_4, %c0_5] : memref<1x128xf32, #tpu.memory_space<vmem>>, vector<1x128xf32>
    %7 = vector.broadcast %6 : vector<1x128xf32> to vector<8x128xf32>
    %8 = arith.addf %5, %7 : vector<8x128xf32>
    %c0_6 = arith.constant 0 : index
    %c0_7 = arith.constant 0 : index
    %9 = vector.load %arg6[%c0_6, %c0_7] : memref<8x128xf32, #tpu.memory_space<vmem>>, vector<8x128xf32>
    tpu.vector_store %arg6[%c0_6, %c0_7], %8 {strides = array<i32>} : memref<8x128xf32, #tpu.memory_space<vmem>>, vector<8x128xf32>,
    return
  }
  func.func @transform_0(%arg0: i32, %arg1: i32, %arg2: memref<8x8xi32, #tpu.memory_space<smem>>) -> (i32, i32) {
    %c0_i32 = arith.constant 0 : i32
    %c0_i32_0 = arith.constant 0 : i32
    %c0_i32_1 = arith.constant 0 : i32
    return %c0_i32, %c0_i32_0 : i32, i32
  }
  func.func @transform_1(%arg0: i32, %arg1: i32, %arg2: memref<8x8xi32, #tpu.memory_space<smem>>) -> (i32, i32) {
    %c0_i32 = arith.constant 0 : i32
    %c0_i32_0 = arith.constant 0 : i32
    return %c0_i32, %arg1 : i32, i32
  }
  func.func @transform_2(%arg0: i32, %arg1: i32, %arg2: memref<8x8xi32, #tpu.memory_space<smem>>) -> (i32, i32) {
    %c0_i32 = arith.constant 0 : i32
    %c0_i32_0 = arith.constant 0 : i32
    return %c0_i32, %arg1 : i32, i32
  }
  func.func @transform_3(%arg0: i32, %arg1: i32, %arg2: memref<8x8xi32, #tpu.memory_space<smem>>) -> (i32, i32) {
    %c0_i32 = arith.constant 0 : i32
    return %arg0, %arg1 : i32, i32
  }
}

</mosaic_0001>

<bundles_post_ra>
// kernel: tpu_custom_call.1
= control target key start
LH: loop header
LB: loop body
LE: loop exit
PB: predicated region body
PF: predicated region fallthrough
CT: control target
= control target key end

     0   :  { %s301_s18 = smov [#allocation4]   ;;  %s357_s0 = inlined_call_operand.hbm [shape: s32[8,8], index: 0, kind: input, shape index: {}]   ;;  %s358_s1 = inlined_call_operand.hbm [shape: f32[128,128], index: 1, kind: input, shape index: {}]   ;;  %s359_s2 = inlined_call_operand.hbm [shape: f32[128,128], index: 2, kind: input, shape index: {}]   ;;  %s360_s3 = inlined_call_operand.vmem [shape: f32[1,128], index: 3, kind: input, shape index: {}]   ;;  %s361_s4 = inlined_call_operand.hbm [shape: f32[8,128], index: 4, kind: output, shape index: {}]  }
   0x1   :  { %s10_s17 = sshll.u32 %s357_s0, 4  ;;  %s11_s17 = int_to_ptr.hbm [resolvable:$true] %s10_s17 }
   0x2   :  { %13 = dma.hbm_to_smem %s11_s17, 128, %s301_s18, [#allocation3] }
   0x3   :  { %289 = dma.done.wait [#allocation3], 128 }
   0x4   :  { %290 = vsyncadd [#allocation3], 4294967168 }
   0x5   :  { %16 = sfence }
   0x6   :  { %17 = vsyncpa [#allocation6], 0 }
   0x7   :  { %18 = vsyncpa [#allocation9], 0 }
   0x8   :  { %19 = vsyncpa [#allocation7], 0  ;;  %s24_s21 = sshll.u32 %s358_s1, 4  ;;  %s302_s22 = smov [#allocation5]   ;;  %s25_s21 = int_to_ptr.hbm [resolvable:$true] %s24_s21 }
   0x9   :  { %s26_s23 = sshll.u32 %s302_s22, 4  ;;  %s37_s0 = sshll.u32 %s359_s2, 4  ;;  %s27_s23 = int_to_ptr.vmem [resolvable:$true] %s26_s23  ;;  %s38_s0 = int_to_ptr.hbm [resolvable:$true] %s37_s0 }
   0xa   :  { %s303_s26 = smov 128   ;;  %s304_s27 = smov 8  }
   0xb   :  { %32 = dma.hbm_to_vmem [thread:$0]  %s25_s21, 2048, %s27_s23, [#allocation6], %s303_s26, %s303_s26, %s304_s27  }
   0xc   :  { %s305_s28 = smov [#allocation8]  }
   0xd   :  { %s39_s29 = sshll.u32 %s305_s28, 4  ;;  %s40_s29 = int_to_ptr.vmem [resolvable:$true] %s39_s29 }
   0xe   :  { %45 = dma.hbm_to_vmem [thread:$0]  %s38_s0, 2048, %s40_s29, [#allocation9], %s303_s26, %s303_s26, %s304_s27  }
   0xf   :  { %291 = dma.done.wait [#allocation6], 2048  }
  0x10   :  { %292 = vsyncadd [#allocation6], 4294965248 }
  0x11   :  { %293 = dma.done.wait [#allocation9], 2048  }
  0x12   :  { %294 = vsyncadd [#allocation9], 4294965248  ;;  %s341_s1 = smov 0  }
  0x13 LB: > { %s185_s2 = sshll.u32 %s299_s1, 7  ;;  %s109_s26 = scalar_lea.vmem [#allocation2], %s299_s1  ;;  %s299_s1 = sphi %s341_s1, %s65_s1  }
  0x14   : > { %s69_s30 = sld [smem:[#allocation4 + %s185_s2]]  ;;  %s73_s5 = sadd.s32 1, %s185_s2 }
  0x15   : > { %s74_s6 = sld [smem:[#allocation4 + %s73_s5]]  ;;  %s78_s7 = sadd.s32 2, %s185_s2 }
  0x16   : > { %s79_s8 = sld [smem:[#allocation4 + %s78_s7]]  ;;  %s83_s9 = sadd.s32 3, %s185_s2 }
  0x17   : > { %s84_s10 = sld [smem:[#allocation4 + %s83_s9]]  ;;  %s88_s11 = sadd.s32 4, %s185_s2 }
  0x18   : > { %s89_s12 = sld [smem:[#allocation4 + %s88_s11]]  ;;  %s93_s13 = sadd.s32 5, %s185_s2 }
  0x19   : > { %s94_s14 = sld [smem:[#allocation4 + %s93_s13]]  ;;  %s98_s15 = sadd.s32 6, %s185_s2 }
  0x1a   : > { %s99_s16 = sld [smem:[#allocation4 + %s98_s15]]  ;;  %s70_s17 = scalar_lea.vmem [#allocation5], %s69_s30 }
  0x1b   : > { %v71_v0 = vld [vmem:[%s70_s17] sm:$0x1]  ;;  %s103_s18 = sadd.s32 7, %s185_s2  ;;  %s75_s19 = scalar_lea.vmem [#allocation5], %s74_s6 }
  0x1c   : > { %v76_v1 = vld [vmem:[%s75_s19] sm:$0x1]  ;;  %s104_s20 = sld [smem:[#allocation4 + %s103_s18]]  ;;  %s80_s21 = scalar_lea.vmem [#allocation5], %s79_s8 }
  0x1d   : > { %v77_v2 = vadd.f32 %v76_v1, %v71_v0  ;;  %v81_v3 = vld [vmem:[%s80_s21] sm:$0x1]  ;;  %s85_s22 = scalar_lea.vmem [#allocation5], %s84_s10  ;;  %s65_s1 = sadd.s32 1, %s299_s1  }
  0x1e   : > { %v86_v4 = vld [vmem:[%s85_s22] sm:$0x1]  ;;  %s90_s23 = scalar_lea.vmem [#allocation5], %s89_s12  ;;  %p62_p0 = scmp.ge.s32.totalorder %s65_s1, 8  }
  0x1f   : > { %v82_v5 = vadd.f32 %v81_v3, %v77_v2  ;;  %v91_v6 = vld [vmem:[%s90_s23] sm:$0x1]  ;;  %s95_s24 = scalar_lea.vmem [#allocation5], %s94_s14  ;;  %v126_v17 = vld [vmem:[#allocation8 + $0x70] sm:$0xff] (%p62_p0)  ;;  %v125_v18 = vld [vmem:[#allocation8 + $0x68] sm:$0xff] (%p62_p0)  ;;  %s306_s29 = smov (%p62_p0), [#allocation10]  }
  0x20   : > { %v96_v8 = vld [vmem:[%s95_s24] sm:$0x1]  ;;  %s100_s25 = scalar_lea.vmem [#allocation5], %s99_s16  ;;  %v124_v19 = vld [vmem:[#allocation8 + $0x60] sm:$0xff] (%p62_p0)  ;;  %v122_v21 = vld [vmem:[#allocation8 + $0x50] sm:$0xff] (%p62_p0)  ;;  %s158_s1 = sshll.u32 (%p62_p0), %s306_s29, 4  ;;  %s159_s1 = int_to_ptr.vmem [resolvable:$true] %s158_s1 }
  0x21   : > { %v87_v7 = vadd.f32 %v86_v4, %v82_v5  ;;  %v101_v10 = vld [vmem:[%s100_s25] sm:$0x1]  ;;  %v121_v22 = vld [vmem:[#allocation8 + $0x48] sm:$0xff] (%p62_p0)  ;;  %v120_v23 = vld [vmem:[#allocation8 + $0x40] sm:$0xff] (%p62_p0)  ;;  %s160_s5 = sshll.u32 (%p62_p0), %s361_s4, 4  ;;  %s161_s5 = int_to_ptr.hbm [resolvable:$true] %s160_s5 }
  0x22   : > { %s105_s0 = scalar_lea.vmem [#allocation5], %s104_s20  ;;  %v127_v16 = vld [vmem:[#allocation8 + $0x78] sm:$0xff] (%p62_p0)  ;;  %v118_v25 = vld [vmem:[#allocation8 + $0x30] sm:$0xff] (%p62_p0)  ;;  %v117_v26 = vld [vmem:[#allocation8 + $0x28] sm:$0xff] (%p62_p0) }
  0x23   : > { %v92_v9 = vadd.f32 %v91_v6, %v87_v7  ;;  %v106_v12 = vld [vmem:[%s105_s0] sm:$0x1]  ;;  %132 = vmatpush.msra.mxu0 (%p62_p0), %v127_v16  ;;  %v116_v27 = vld [vmem:[#allocation8 + $0x20] sm:$0xff] (%p62_p0)  ;;  %v114_v29 = vld [vmem:[#allocation8 + $0x10] sm:$0xff] (%p62_p0) }
  0x24   :  { %v123_v20 = vld [vmem:[#allocation8 + $0x58] sm:$0xff] (%p62_p0)  ;;  %v113_v30 = vld [vmem:[#allocation8 + $0x8] sm:$0xff] (%p62_p0)  ;;  %v112_v31 = vld [vmem:[#allocation8] sm:$0xff] (%p62_p0) }
  0x25   : > { %v97_v11 = vadd.f32 %v96_v8, %v92_v9  ;;  %133 = vmatpush.msra.mxu0 (%p62_p0), %v126_v17  ;;  %v119_v24 = vld [vmem:[#allocation8 + $0x38] sm:$0xff] (%p62_p0) }
  0x26   :  { %v115_v28 = vld [vmem:[#allocation8 + $0x18] sm:$0xff] (%p62_p0) }
  0x27   : > { %v102_v13 = vadd.f32 %v101_v10, %v97_v11  ;;  %134 = vmatpush.msra.mxu0 (%p62_p0), %v125_v18  ;;  %v200_v33 = vld [vmem:[%s360_s3] ss:$0 sm:$0xff] (%p62_p0) }
  0x29   : > { %v107_v14 = vadd.f32 %v106_v12, %v102_v13  ;;  %64 = sbr.rel (!%p62_p0) target bundleno = 19 (0x13), region = 60  ;;  %135 = vmatpush.msra.mxu0 (%p62_p0), %v124_v19 }
  0x2b   : > { %v108_v15 = vmul.f32 0.125, %v107_v14  ;;  %136 = vmatpush.msra.mxu0 (%p62_p0), %v123_v20 }
  0x2d   : > { %110 = vst [vmem:[%s109_s26] sm:$0x1] %v108_v15  ;;  %137 = vmatpush.msra.mxu0 (%p62_p0), %v122_v21 }
  0x2f   :  { %138 = vmatpush.msra.mxu0 %v121_v22 }
  0x31   :  { %139 = vmatpush.msra.mxu0 %v120_v23 }
  0x33   :  { %140 = vmatpush.msra.mxu0 %v119_v24 }
  0x34   :  { %v111_v32 = vld [vmem:[#allocation2] sm:$0xff] }
  0x35   :  { %141 = vmatpush.msra.mxu0 %v118_v25 }
  0x37   :  { %142 = vmatpush.msra.mxu0 %v117_v26 }
  0x39   :  { %143 = vmatpush.msra.mxu0 %v116_v27 }
  0x3b   :  { %144 = vmatpush.msra.mxu0 %v115_v28 }
  0x3d   :  { %145 = vmatpush.msra.mxu0 %v114_v29 }
  0x3f   :  { %146 = vmatpush.msra.mxu0 %v113_v30 }
  0x41   :  { %147 = vmatpush.msra.mxu0 %v112_v31 }
  0x42   :  { %148 = vmatmul.f32.vlgmr.msra.gmra.mxu0 %v111_v32 }
  0xbf   :  { %v149_v34 = vpop.f32.mrf.mxu0 }
  0xc0   :  { %v150_v35 = vadd.f32 %v200_v33, %v149_v34 }
  0xc2   :  { %152 = vst [vmem:[#allocation10] sm:$0xff] %v150_v35 }
  0xc3   :  { %163 = dma.vmem_to_hbm [thread:$0]  %s159_s1, 128, %s161_s5, [#allocation7]  }
  0xc4   :  { %295 = dma.done.wait [#allocation7], 128  }
  0xc5   :  { %296 = vsyncadd [#allocation7], 4294967168 }
  0xc6   :  { %168 = vsyncpa [#allocation6], 1 }
  0xc7   :  { %169 = vsyncpa [#allocation9], 1 }
  0xc8   :  { %170 = vsyncpa [#allocation7], 1 }

</bundles_post_ra>
